<compile_context>
chip_gen: v7x
topology: tpu7x:2x2x1
jax: 0.10.0
libtpu: 0.0.40
codegen_flags: <defaults>
</compile_context>

<pallas_src>
import functools

import jax
import jax.numpy as jnp
from jax import lax
from jax.experimental import pallas as pl
from jax.experimental.pallas import tpu as pltpu


def actor_kernel(x_ref, w1_ref, b1_ref, w2_ref, b2_ref, w3_ref, b3_ref, o_ref):
    """Whole 3-layer MLP for one (batch_tile, state_dim) block of `state`.

    All matmuls use the rhs-transposed contraction (contract dim 1 of both
    operands) so PyTorch-layout weights (out, in) are consumed directly and
    no transpose op is ever emitted (neither in the kernel nor the wrapper).
    """
    x = x_ref[...]                                               # (T, S)

    # Layer 1: (T, S) @ (N, S)^T -> (T, N), + bias row, ReLU.
    a = lax.dot_general(x, w1_ref[...], (((1,), (1,)), ((), ())),
                        preferred_element_type=jnp.float32)
    a = jnp.maximum(a + b1_ref[...], 0.0)

    # Layer 2: (T, N) @ (N, N)^T -> (T, N), + bias row, ReLU.
    a = lax.dot_general(a, w2_ref[...], (((1,), (1,)), ((), ())),
                        preferred_element_type=jnp.float32)
    a = jnp.maximum(a + b2_ref[...], 0.0)

    # Layer 3: (T, N) @ (A, N)^T -> (T, A), then (tanh(.) + 1) / 2.
    a = lax.dot_general(a, w3_ref[...], (((1,), (1,)), ((), ())),
                        preferred_element_type=jnp.float32)
    o_ref[...] = ((jnp.tanh(a + b3_ref[...]) + 1.0) * 0.5).astype(o_ref.dtype)


def _choose_batch_tile(B):
    """Pick the batch tile.

    * B < 256: whole batch in one grid step (working set is tiny).
    * B >= 256: tile is a multiple of 128, capped at 1024, and small enough
      that the grid has >= 2 "parallel" steps so both v7x TensorCores get
      work.  Per-step working set at tile=1024 is < 1 MiB, so VMEM (even the
      v7x 64 MiB per-TC) is a non-issue on every generation.
    """
    if B < 256:
        return B
    cap = 1024
    half = (B + 1) // 2
    return min(cap, max(128, (half // 128) * 128))


@functools.partial(jax.jit, static_argnames=("batch_tile",))
def actor_forward(state, params, *, batch_tile=None):
    """state: (B, state_dim).  params in PyTorch layout: W (out, in), b (out,)."""
    w1, b1, w2, b2, w3, b3 = params
    B, state_dim = state.shape
    num_nodes = w1.shape[0]
    action_dim = w3.shape[0]

    if batch_tile is None:
        batch_tile = _choose_batch_tile(B)

    # Pad the batch up to a multiple of the tile (padded rows compute finite
    # values on zero inputs and are sliced away).  Keeps the fast tiled path
    # for irregular batches instead of one giant single-step tile.
    num_tiles = pl.cdiv(B, batch_tile)
    B_pad = num_tiles * batch_tile
    x = state if B_pad == B else jnp.pad(state, ((0, B_pad - B), (0, 0)))

    # Biases as (1, out) rows so they broadcast over the batch (sublane) axis.
    b1r = b1.reshape(1, num_nodes)
    b2r = b2.reshape(1, num_nodes)
    b3r = b3.reshape(1, action_dim)

    def rep(i):  # weights/biases: same block every step -> resident in VMEM
        return (0, 0)

    out = pl.pallas_call(
        actor_kernel,
        out_shape=jax.ShapeDtypeStruct((B_pad, action_dim), state.dtype),
        grid_spec=pl.GridSpec(
            grid=(num_tiles,),
            in_specs=[
                pl.BlockSpec((batch_tile, state_dim), lambda i: (i, 0)),  # state
                pl.BlockSpec((num_nodes, state_dim), rep),                # W1
                pl.BlockSpec((1, num_nodes), rep),                        # b1
                pl.BlockSpec((num_nodes, num_nodes), rep),                # W2
                pl.BlockSpec((1, num_nodes), rep),                        # b2
                pl.BlockSpec((action_dim, num_nodes), rep),               # W3
                pl.BlockSpec((1, action_dim), rep),                       # b3
            ],
            out_specs=pl.BlockSpec((batch_tile, action_dim), lambda i: (i, 0)),
        ),
        compiler_params=pltpu.CompilerParams(
            dimension_semantics=("parallel",),
        ),
    )(x, w1, b1r, w2, b2r, w3, b3r)

    return out if B_pad == B else out[:B]


def init_actor_params(key, state_dim, action_dim, num_nodes=32, dtype=jnp.float32):
    """nn.Linear-style U(-1/sqrt(fan_in), 1/sqrt(fan_in)); PyTorch (out,in)/(out,) layout."""
    ks = jax.random.split(key, 6)

    def linear(kw, kb, fan_in, fan_out):
        bound = 1.0 / jnp.sqrt(fan_in)
        w = jax.random.uniform(kw, (fan_out, fan_in), dtype, -bound, bound)
        b = jax.random.uniform(kb, (fan_out,), dtype, -bound, bound)
        return w, b

    w1, b1 = linear(ks[0], ks[1], state_dim, num_nodes)
    w2, b2 = linear(ks[2], ks[3], num_nodes, num_nodes)
    w3, b3 = linear(ks[4], ks[5], num_nodes, action_dim)
    return (w1, b1, w2, b2, w3, b3)


def actor_reference(state, params):
    """Pure-JAX reference matching the PyTorch forward."""
    w1, b1, w2, b2, w3, b3 = params
    a = jnp.maximum(state @ w1.T + b1, 0.0)
    a = jnp.maximum(a @ w2.T + b2, 0.0)
    return (jnp.tanh(a @ w3.T + b3) + 1.0) / 2.0


if __name__ == "__main__":
    key = jax.random.PRNGKey(0)
    k_state, k_params, k_big, k_odd = jax.random.split(key, 4)

    batch, state_dim, action_dim, num_nodes = 8, 16, 4, 32
    params = init_actor_params(k_params, state_dim, action_dim, num_nodes)

    # Small-batch check (single grid step, whole batch in one tile).
    state = jax.random.normal(k_state, (batch, state_dim), jnp.float32)
    out = jax.block_until_ready(actor_forward(state, params))
    ref = actor_reference(state, params)
    assert out.shape == (batch, action_dim)
    assert jnp.allclose(out, ref, atol=1e-5, rtol=1e-5), "small-batch mismatch"

    # Tiled path at a realistic RL batch: 512-wide tiles, 2 parallel grid steps
    # (both v7x TensorCores busy).
    big_state = jax.random.normal(k_big, (1024, state_dim), jnp.float32)
    big_out = jax.block_until_ready(actor_forward(big_state, params))
    big_ref = actor_reference(big_state, params)
    assert big_out.shape == (1024, action_dim)
    assert jnp.allclose(big_out, big_ref, atol=1e-5, rtol=1e-5), "tiled mismatch"

    # Irregular batch: exercises the pad-to-tile path (128-wide tiles, 3 steps).
    odd_state = jax.random.normal(k_odd, (300, state_dim), jnp.float32)
    odd_out = jax.block_until_ready(actor_forward(odd_state, params))
    odd_ref = actor_reference(odd_state, params)
    assert odd_out.shape == (300, action_dim)
    assert jnp.allclose(odd_out, odd_ref, atol=1e-5, rtol=1e-5), "padded mismatch"

    print("KERNEL_OK")
</pallas_src>

<mosaic_0001>
module attributes {stable_mosaic.version = 11 : i64} {
  func.func @actor_kernel(%arg0: i32, %arg1: memref<8x16xf32, #tpu.memory_space<vmem>>, %arg2: memref<32x16xf32, #tpu.memory_space<vmem>>, %arg3: memref<1x32xf32, #tpu.memory_space<vmem>>, %arg4: memref<32x32xf32, #tpu.memory_space<vmem>>, %arg5: memref<1x32xf32, #tpu.memory_space<vmem>>, %arg6: memref<4x32xf32, #tpu.memory_space<vmem>>, %arg7: memref<1x4xf32, #tpu.memory_space<vmem>>, %arg8: memref<8x4xf32, #tpu.memory_space<vmem>>) attributes {dimension_semantics = [#tpu.dimension_semantics<parallel>], iteration_bounds = array<i64: 1>, scalar_prefetch = 0 : i64, scratch_operands = 0 : i64, tpu.core_type = #tpu.core_type<tc>, window_params = [{transform_indices = @transform_0, window_bounds = array<i64: 8, 16>}, {pipeline_mode = #tpu.pipeline_mode<synchronous>, transform_indices = @transform_1, window_bounds = array<i64: 32, 16>}, {pipeline_mode = #tpu.pipeline_mode<synchronous>, transform_indices = @transform_2, window_bounds = array<i64: 1, 32>}, {pipeline_mode = #tpu.pipeline_mode<synchronous>, transform_indices = @transform_3, window_bounds = array<i64: 32, 32>}, {pipeline_mode = #tpu.pipeline_mode<synchronous>, transform_indices = @transform_4, window_bounds = array<i64: 1, 32>}, {pipeline_mode = #tpu.pipeline_mode<synchronous>, transform_indices = @transform_5, window_bounds = array<i64: 4, 32>}, {pipeline_mode = #tpu.pipeline_mode<synchronous>, transform_indices = @transform_6, window_bounds = array<i64: 1, 4>}, {transform_indices = @transform_7, window_bounds = array<i64: 8, 4>}]} {
    %c0 = arith.constant 0 : index
    %c0_0 = arith.constant 0 : index
    %0 = vector.load %arg1[%c0, %c0_0] : memref<8x16xf32, #tpu.memory_space<vmem>>, vector<8x16xf32>
    %c0_1 = arith.constant 0 : index
    %c0_2 = arith.constant 0 : index
    %1 = vector.load %arg2[%c0_1, %c0_2] : memref<32x16xf32, #tpu.memory_space<vmem>>, vector<32x16xf32>
    %cst = arith.constant dense<0.000000e+00> : vector<8x32xf32>
    %2 = tpu.matmul %0, %1, %cst {dimension_numbers = #tpu.dot_dimension_numbers<[1], [1], [0], [0], [0, 0, 1, 0], [], []>} : vector<8x16xf32>, vector<32x16xf32>, vector<8x32xf32> -> vector<8x32xf32>
    %c0_3 = arith.constant 0 : index
    %c0_4 = arith.constant 0 : index
    %3 = vector.load %arg3[%c0_3, %c0_4] : memref<1x32xf32, #tpu.memory_space<vmem>>, vector<1x32xf32>
    %4 = vector.broadcast %3 : vector<1x32xf32> to vector<8x32xf32>
    %5 = arith.addf %2, %4 : vector<8x32xf32>
    %cst_5 = arith.constant 0.000000e+00 : f32
    %6 = vector.broadcast %cst_5 : f32 to vector<8x32xf32>
    %7 = arith.maximumf %5, %6 : vector<8x32xf32>
    %c0_6 = arith.constant 0 : index
    %c0_7 = arith.constant 0 : index
    %8 = vector.load %arg4[%c0_6, %c0_7] : memref<32x32xf32, #tpu.memory_space<vmem>>, vector<32x32xf32>
    %cst_8 = arith.constant dense<0.000000e+00> : vector<8x32xf32>
    %9 = tpu.matmul %7, %8, %cst_8 {dimension_numbers = #tpu.dot_dimension_numbers<[1], [1], [0], [0], [0, 0, 1, 0], [], []>} : vector<8x32xf32>, vector<32x32xf32>, vector<8x32xf32> -> vector<8x32xf32>
    %c0_9 = arith.constant 0 : index
    %c0_10 = arith.constant 0 : index
    %10 = vector.load %arg5[%c0_9, %c0_10] : memref<1x32xf32, #tpu.memory_space<vmem>>, vector<1x32xf32>
    %11 = vector.broadcast %10 : vector<1x32xf32> to vector<8x32xf32>
    %12 = arith.addf %9, %11 : vector<8x32xf32>
    %cst_11 = arith.constant 0.000000e+00 : f32
    %13 = vector.broadcast %cst_11 : f32 to vector<8x32xf32>
    %14 = arith.maximumf %12, %13 : vector<8x32xf32>
    %c0_12 = arith.constant 0 : index
    %c0_13 = arith.constant 0 : index
    %15 = vector.load %arg6[%c0_12, %c0_13] : memref<4x32xf32, #tpu.memory_space<vmem>>, vector<4x32xf32>
    %cst_14 = arith.constant dense<0.000000e+00> : vector<8x4xf32>
    %16 = tpu.matmul %14, %15, %cst_14 {dimension_numbers = #tpu.dot_dimension_numbers<[1], [1], [0], [0], [0, 0, 1, 0], [], []>} : vector<8x32xf32>, vector<4x32xf32>, vector<8x4xf32> -> vector<8x4xf32>
    %c0_15 = arith.constant 0 : index
    %c0_16 = arith.constant 0 : index
    %17 = vector.load %arg7[%c0_15, %c0_16] : memref<1x4xf32, #tpu.memory_space<vmem>>, vector<1x4xf32>
    %18 = vector.broadcast %17 : vector<1x4xf32> to vector<8x4xf32>
    %19 = arith.addf %16, %18 : vector<8x4xf32>
    %20 = math.tanh %19 : vector<8x4xf32>
    %cst_17 = arith.constant 1.000000e+00 : f32
    %21 = vector.broadcast %cst_17 : f32 to vector<8x4xf32>
    %22 = arith.addf %20, %21 : vector<8x4xf32>
    %cst_18 = arith.constant 5.000000e-01 : f32
    %23 = vector.broadcast %cst_18 : f32 to vector<8x4xf32>
    %24 = arith.mulf %22, %23 : vector<8x4xf32>
    %c0_19 = arith.constant 0 : index
    %c0_20 = arith.constant 0 : index
    %25 = vector.load %arg8[%c0_19, %c0_20] : memref<8x4xf32, #tpu.memory_space<vmem>>, vector<8x4xf32>
    tpu.vector_store %arg8[%c0_19, %c0_20], %24 {strides = array<i32>} : memref<8x4xf32, #tpu.memory_space<vmem>>, vector<8x4xf32>,
    return
  }
  func.func @transform_0(%arg0: i32) -> (i32, i32) {
    %c0_i32 = arith.constant 0 : i32
    %c0_i32_0 = arith.constant 0 : i32
    return %arg0, %c0_i32 : i32, i32
  }
  func.func @transform_1(%arg0: i32) -> (i32, i32) {
    %c0_i32 = arith.constant 0 : i32
    %c0_i32_0 = arith.constant 0 : i32
    %c0_i32_1 = arith.constant 0 : i32
    return %c0_i32, %c0_i32_0 : i32, i32
  }
  func.func @transform_2(%arg0: i32) -> (i32, i32) {
    %c0_i32 = arith.constant 0 : i32
    %c0_i32_0 = arith.constant 0 : i32
    %c0_i32_1 = arith.constant 0 : i32
    return %c0_i32, %c0_i32_0 : i32, i32
  }
  func.func @transform_3(%arg0: i32) -> (i32, i32) {
    %c0_i32 = arith.constant 0 : i32
    %c0_i32_0 = arith.constant 0 : i32
    %c0_i32_1 = arith.constant 0 : i32
    return %c0_i32, %c0_i32_0 : i32, i32
  }
  func.func @transform_4(%arg0: i32) -> (i32, i32) {
    %c0_i32 = arith.constant 0 : i32
    %c0_i32_0 = arith.constant 0 : i32
    %c0_i32_1 = arith.constant 0 : i32
    return %c0_i32, %c0_i32_0 : i32, i32
  }
  func.func @transform_5(%arg0: i32) -> (i32, i32) {
    %c0_i32 = arith.constant 0 : i32
    %c0_i32_0 = arith.constant 0 : i32
    %c0_i32_1 = arith.constant 0 : i32
    return %c0_i32, %c0_i32_0 : i32, i32
  }
  func.func @transform_6(%arg0: i32) -> (i32, i32) {
    %c0_i32 = arith.constant 0 : i32
    %c0_i32_0 = arith.constant 0 : i32
    %c0_i32_1 = arith.constant 0 : i32
    return %c0_i32, %c0_i32_0 : i32, i32
  }
  func.func @transform_7(%arg0: i32) -> (i32, i32) {
    %c0_i32 = arith.constant 0 : i32
    %c0_i32_0 = arith.constant 0 : i32
    return %arg0, %c0_i32 : i32, i32
  }
}

</mosaic_0001>

<bundles_post_ra>
// kernel: actor_forward.1
= control target key start
LH: loop header
LB: loop body
LE: loop exit
PB: predicated region body
PF: predicated region fallthrough
CT: control target
= control target key end

     0   :  { %vm38_vm0 = vcmask 130048   ;;  %v391_v0 = vmov 0.0|0.0   ;;  %vm392_vm2 = vmmov 0   ;;  %v393_v4 = vmov 0.0   ;;  %s495_s1 = inlined_call_operand.vmem [shape: f32[32,16], index: 1, kind: input, shape index: {}]   ;;  %s496_s3 = inlined_call_operand.vmem [shape: f32[32,32], index: 3, kind: input, shape index: {}]   ;;  %s497_s0 = inlined_call_operand.vmem [shape: f32[8,16], index: 0, kind: input, shape index: {}]   ;;  %s498_s2 = inlined_call_operand.vmem [shape: f32[1,32], index: 2, kind: input, shape index: {}]   ;;  %s499_s5 = inlined_call_operand.vmem [shape: f32[4,32], index: 5, kind: input, shape index: {}]   ;;  %s500_s4 = inlined_call_operand.vmem [shape: f32[1,32], index: 4, kind: input, shape index: {}]   ;;  %s501_s6 = inlined_call_operand.vmem [shape: f32[1,4], index: 6, kind: input, shape index: {}]   ;;  %s502_s7 = inlined_call_operand.vmem [shape: f32[8,4], index: 7, kind: output, shape index: {}]  }
   0x1   :  { %370 = vmatprep.subr.bf16.mxu0 %v391_v0  ;;  %v27_v1 = vld [vmem:[%s495_s1] sm:$0xff]  ;;  %v28_v2 = vld [vmem:[%s495_s1 + $0x8] sm:$0xff]  ;;  %vm442_vm1 = vmpackc.low %vm38_vm0, %vm38_vm0  ;;  %351 = vmatprep.mubr.msk.f32.mxu0 %vm392_vm2, %v393_v4  ;;  %vm136_vm3 = vcmask 261120   ;;  %vm310_vm5 = vcmask 31744  }
   0x2   :  { %v371_v5 = vpack.c.bf16 %v28_v2, %v27_v1  ;;  %378 = vmatprep.subr.bf16.mxu1 %v391_v0  ;;  %362 = vmatprep.mubr.msk.f32.mxu1 %vm392_vm2, %v393_v4  ;;  %v125_v6 = vld [vmem:[%s496_s3] sm:$0xff]  ;;  %v126_v7 = vld [vmem:[%s496_s3 + $0x8] sm:$0xff]  ;;  %vm380_vm4 = vmpackc.low %vm136_vm3, %vm136_vm3 }
   0x3   :  { %v379_v8 = vpack.c.bf16 %v126_v7, %v125_v6  ;;  %v29_v9 = vld [vmem:[%s495_s1 + $0x10] sm:$0xff]  ;;  %v30_v10 = vld [vmem:[%s495_s1 + $0x18] sm:$0xff]  ;;  %v26_v15 = vld [vmem:[%s497_s0] sm:$0xff] }
   0x4   :  { %373 = vmatpush3.bf16.xpose.msk.msra.mxu0 %vm442_vm1, %v371_v5  ;;  %v127_v11 = vld [vmem:[%s496_s3 + $0x10] sm:$0xff]  ;;  %v128_v12 = vld [vmem:[%s496_s3 + $0x18] sm:$0xff]  ;;  %v375_v13 = vpack.c.bf16 %v30_v10, %v29_v9  ;;  %v316_v16 = vld [vmem:[%s498_s2] ss:$0 sm:$0xff] }
   0x5   :  { %374 = vmatprep.subr.bf16.mxu0 %v391_v0  ;;  %381 = vmatpush3.bf16.xpose.msk.msra.mxu1 %vm380_vm4, %v379_v8  ;;  %v383_v14 = vpack.c.bf16 %v128_v12, %v127_v11  ;;  %v223_v21 = vld [vmem:[%s499_s5] sm:$0xf] }
   0x6   :  { %382 = vmatprep.subr.bf16.mxu1 %v391_v0  ;;  %v322_v22 = vld [vmem:[%s500_s4] ss:$0 sm:$0xff] }
   0x7   :  { %v328_v27 = vld [vmem:[%s501_s6] ss:$0 sm:$0xff] }
   0xc   :  { %377 = vmatpush3.bf16.xpose.msk.msra.mxu0 %vm442_vm1, %v375_v13 }
   0xd   :  { %365 = vmatprep.subr.mxu0 %v393_v4  ;;  %385 = vmatpush3.bf16.xpose.msk.msra.mxu1 %vm380_vm4, %v383_v14 }
  0x13   :  { %352 = vmatmul.mubr.msk.f32.vlgmr.msra.gmra.mrb[0].mxu0 %vm38_vm0, %v26_v15 }
  0x14   :  { %367 = vmatprep.mubr.msk.f32.mxu0 %vm392_vm2, %v393_v4  ;;  %366 = vmatpush3.xpose.msk.msra.mxu0 %vm136_vm3, %v223_v21 }
  0xe6   :  { %v120_v17 = vpop.f32.mrb[0].mxu0 }
  0xe7   :  { %v121_v18 = vadd.f32 %v316_v16, %v120_v17  ;;  %v353_v19 = vpop.f32.mrb[1].mxu0 }
  0xe9   :  { %v124_v20 = vmax.f32 %v121_v18, 0.0 }
  0xeb   :  { %363 = vmatmul.mubr.msk.f32.vlgmr.msra.gmra.mrb[0].mxu1 %vm136_vm3, %v124_v20 }
 0x1be   :  { %v218_v23 = vpop.f32.mrb[0].mxu1 }
 0x1bf   :  { %v219_v24 = vadd.f32 %v322_v22, %v218_v23  ;;  %v364_v25 = vpop.f32.mrb[1].mxu1 }
 0x1c1   :  { %v222_v26 = vmax.f32 %v219_v24, 0.0 }
 0x1c3   :  { %368 = vmatmul.mubr.msk.f32.vlgmr.msra.gmra.mrb[2].mxu0 %vm136_vm3, %v222_v26 }
 0x296   :  { %v303_v28 = vpop.f32.mrb[2].mxu0 }
 0x297   :  { %v304_v29 = vadd.f32 %v328_v27, %v303_v28  ;;  %v369_v30 = vpop.f32.mrb[3].mxu0 }
 0x299   :  { %389 = vtanh.f32 %v304_v29 }
 0x2a3   :  { %v390_v31 = vpop.eup %389 }
 0x2a4   :  { %v308_v32 = vadd.f32 1.0, %v390_v31 }
 0x2a6   :  { %v309_v33 = vmul.f32 0.5, %v308_v32 }
 0x2a8   :  { %311 = vst.msk [vmem:[%s502_s7] sm:$0xff] %vm310_vm5, %v309_v33 }

</bundles_post_ra>
